<compile_context>
chip_gen: v5e
topology: v5e:2x2
jax: 0.10.0
libtpu: 0.0.40
codegen_flags: <defaults>
</compile_context>

<pallas_src>
import jax
import jax.numpy as jnp
from jax.experimental import pallas as pl
from jax.experimental.pallas import tpu as pltpu

_LANE = 128


def _round_up(a: int, b: int) -> int:
    return -(-a // b) * b


def _make_gap_kernel(n_k: int, inv_hw: float):
    """Row-mean over a (R, tk) input block; K-chunked reduction over the lane axis."""

    def kernel(x_ref, o_ref, acc_ref):
        k = pl.program_id(1)

        @pl.when(k == 0)
        def _init():
            acc_ref[...] = jnp.zeros_like(acc_ref)

        # f32 accumulation; dtype arg widens per-vreg as the block streams.
        acc_ref[...] += jnp.sum(x_ref[...], axis=-1, dtype=jnp.float32)

        @pl.when(k == n_k - 1)
        def _finalize():
            o_ref[...] = (acc_ref[...] * inv_hw).astype(o_ref.dtype)[None, :]

    return kernel


def global_avg_pool(x):
    """x: (N, C, H, W) -> (N, C), mean over dims [-2, -1] (torch.mean semantics)."""
    N, C, H, W = x.shape
    HW = H * W
    rows = N * C
    out_dtype = x.dtype
    itemsize = jnp.dtype(x.dtype).itemsize

    x2 = x.reshape(rows, HW)  # free reshape for contiguous NCHW

    # ---- generation-aware VMEM budget --------------------------------------
    try:
        vmem_cap = int(pltpu.get_tpu_info().vmem_capacity_bytes)
    except Exception:
        vmem_cap = 64 * 2**20          # conservative: v7x per-TC capacity
    vmem_budget = (vmem_cap * 7) // 10  # ~70% of physical VMEM
    # Per-step input block: 2x (double-buffered) blocks must fit the budget with
    # room for output/scratch: ~18 MiB on v7x, capped at 32 MiB on v5e/v6e.
    max_block_bytes = min(32 * 2**20, (vmem_budget * 2) // 5)

    row_vmem = _round_up(HW, _LANE) * itemsize     # lane-padded VMEM bytes per row

    single_block_ok = rows * row_vmem <= max_block_bytes
    row_tiling_ok = _LANE * row_vmem <= max_block_bytes

    if single_block_ok or row_tiling_ok:
        # ---- tile over rows only (common case) ----
        tk, cols, K = HW, HW, 1
        r_cap = max(_LANE, (max_block_bytes // row_vmem) // _LANE * _LANE)
        must_tile = not single_block_ok
        if must_tile or rows >= 2 * _LANE:
            # Candidate splits into >= 2 blocks of R rows (R must be a multiple of
            # 128 so the lane-dense output block stays legal). Pick lowest padding.
            n_min = max(-(-rows // r_cap), 2)
            n_max = max(n_min, min(n_min + 7, -(-rows // _LANE)))
            best_R = _round_up(-(-rows // n_min), _LANE)
            best_pad = _round_up(rows, best_R) - rows
            for n_blk in range(n_min, n_max + 1):
                r_split = _round_up(-(-rows // n_blk), _LANE)
                pad = _round_up(rows, r_split) - rows
                if pad < best_pad:
                    best_R, best_pad = r_split, pad
                if pad == 0:
                    break
            if must_tile or best_pad * 8 <= rows:
                R = best_R                 # needed or cheap -> feeds both v7x TCs
            else:
                R = rows                   # padding too costly; keep a single block
        else:
            R = rows
    else:
        # ---- rows too wide: add an "arbitrary" reduction axis over H*W ----
        R = rows if rows < 2 * _LANE else _LANE
        tk = max(_LANE, (max_block_bytes // (R * itemsize)) // _LANE * _LANE)
        cols = _round_up(HW, tk)
        K = cols // tk

    padded_rows = _round_up(rows, R)
    G = padded_rows // R
    if padded_rows != rows or cols != HW:
        # Zero padding contributes 0 to the sums; padded rows are sliced off below.
        x2 = jnp.pad(x2, ((0, padded_rows - rows), (0, cols - HW)))

    kernel = _make_gap_kernel(K, 1.0 / float(HW))

    out2 = pl.pallas_call(
        kernel,
        out_shape=jax.ShapeDtypeStruct((1, padded_rows), out_dtype),
        grid_spec=pltpu.PrefetchScalarGridSpec(
            num_scalar_prefetch=0,
            grid=(G, K),
            in_specs=[pl.BlockSpec((R, tk), lambda i, k: (i, k))],
            out_specs=pl.BlockSpec((1, R), lambda i, k: (0, i)),
            scratch_shapes=[pltpu.VMEM((R,), jnp.float32)],
        ),
        compiler_params=pltpu.CompilerParams(
            dimension_semantics=("parallel", "arbitrary"),
            vmem_limit_bytes=int(vmem_budget),
        ),
        cost_estimate=pl.CostEstimate(
            flops=rows * HW,
            transcendentals=0,
            bytes_accessed=padded_rows * cols * itemsize + padded_rows * itemsize,
        ),
    )(x2)

    return out2[0, :rows].reshape(N, C)


if __name__ == "__main__":
    key = jax.random.PRNGKey(0)
    x = jax.random.normal(key, (2, 4, 16, 16), dtype=jnp.float32)

    out = global_avg_pool(x)
    out = jax.block_until_ready(out)

    # Reference: same semantics as torch.mean(x, dim=[-2, -1]).
    ref = jnp.mean(x, axis=(-2, -1))
    assert out.shape == (2, 4)
    assert jnp.allclose(out, ref, atol=1e-5, rtol=1e-5)

    # Extra sanity check: non-power-of-two spatial dims (still single-block path).
    x2 = jax.random.normal(jax.random.PRNGKey(0), (3, 5, 7, 9), dtype=jnp.float32)
    out2 = jax.block_until_ready(global_avg_pool(x2))
    ref2 = jnp.mean(x2, axis=(-2, -1))
    assert out2.shape == (3, 5)
    assert jnp.allclose(out2, ref2, atol=1e-5, rtol=1e-5)

    print("KERNEL_OK")
</pallas_src>

<mosaic_0001>
module attributes {stable_mosaic.version = 11 : i64} {
  func.func @kernel(%arg0: i32, %arg1: i32, %arg2: memref<8x256xf32, #tpu.memory_space<vmem>>, %arg3: memref<1x8xf32, #tpu.memory_space<vmem>>, %arg4: memref<8xf32, #tpu.memory_space<vmem>>) attributes {dimension_semantics = [#tpu.dimension_semantics<parallel>, #tpu.dimension_semantics<arbitrary>], iteration_bounds = array<i64: 1, 1>, scalar_prefetch = 0 : i64, scratch_operands = 1 : i64, tpu.core_type = #tpu.core_type<tc>, window_params = [{transform_indices = @transform_0, window_bounds = array<i64: 8, 256>}, {transform_indices = @transform_1, window_bounds = array<i64: 1, 8>}]} {
    %c0_i32 = arith.constant 0 : i32
    %0 = arith.cmpi eq, %arg1, %c0_i32 : i32
    %1 = arith.extui %0 : i1 to i32
    %c0_i32_0 = arith.constant 0 : i32
    %2 = arith.cmpi ne, %1, %c0_i32_0 : i32
    scf.if %2 {
      %cst_6 = arith.constant 0.000000e+00 : f32
      %11 = vector.broadcast %cst_6 : f32 to vector<8xf32>
      %c0_7 = arith.constant 0 : index
      %12 = vector.load %arg4[%c0_7] : memref<8xf32, #tpu.memory_space<vmem>>, vector<8xf32>
      tpu.vector_store %arg4[%c0_7], %11 {strides = array<i32>} : memref<8xf32, #tpu.memory_space<vmem>>, vector<8xf32>,
    } else {
    }
    %c0 = arith.constant 0 : index
    %3 = vector.load %arg4[%c0] : memref<8xf32, #tpu.memory_space<vmem>>, vector<8xf32>
    %c0_1 = arith.constant 0 : index
    %c0_2 = arith.constant 0 : index
    %4 = vector.load %arg2[%c0_1, %c0_2] : memref<8x256xf32, #tpu.memory_space<vmem>>, vector<8x256xf32>
    %cst = arith.constant dense<0.000000e+00> : vector<8xf32>
    %5 = vector.multi_reduction <add>, %4, %cst [1] : vector<8x256xf32> to vector<8xf32>
    %6 = arith.addf %3, %5 : vector<8xf32>
    %c0_3 = arith.constant 0 : index
    %7 = vector.load %arg4[%c0_3] : memref<8xf32, #tpu.memory_space<vmem>>, vector<8xf32>
    tpu.vector_store %arg4[%c0_3], %6 {strides = array<i32>} : memref<8xf32, #tpu.memory_space<vmem>>, vector<8xf32>,
    %c0_i32_4 = arith.constant 0 : i32
    %8 = arith.cmpi eq, %arg1, %c0_i32_4 : i32
    %9 = arith.extui %8 : i1 to i32
    %c0_i32_5 = arith.constant 0 : i32
    %10 = arith.cmpi ne, %9, %c0_i32_5 : i32
    scf.if %10 {
      %c0_6 = arith.constant 0 : index
      %11 = vector.load %arg4[%c0_6] : memref<8xf32, #tpu.memory_space<vmem>>, vector<8xf32>
      %cst_7 = arith.constant 3.906250e-03 : f32
      %12 = vector.broadcast %cst_7 : f32 to vector<8xf32>
      %13 = arith.mulf %11, %12 : vector<8xf32>
      %14 = vector.shape_cast %13 : vector<8xf32> to vector<1x8xf32>
      %c0_8 = arith.constant 0 : index
      %c0_9 = arith.constant 0 : index
      %15 = vector.load %arg3[%c0_8, %c0_9] : memref<1x8xf32, #tpu.memory_space<vmem>>, vector<1x8xf32>
      tpu.vector_store %arg3[%c0_8, %c0_9], %14 {strides = array<i32>} : memref<1x8xf32, #tpu.memory_space<vmem>>, vector<1x8xf32>,
    } else {
    }
    return
  }
  func.func @transform_0(%arg0: i32, %arg1: i32) -> (i32, i32) {
    %c0_i32 = arith.constant 0 : i32
    return %arg0, %arg1 : i32, i32
  }
  func.func @transform_1(%arg0: i32, %arg1: i32) -> (i32, i32) {
    %c0_i32 = arith.constant 0 : i32
    %c0_i32_0 = arith.constant 0 : i32
    return %c0_i32, %arg0 : i32, i32
  }
}

</mosaic_0001>

<bundles_post_ra>
// kernel: tpu_custom_call.1
= control target key start
LH: loop header
LB: loop body
LE: loop exit
PB: predicated region body
PF: predicated region fallthrough
CT: control target
= control target key end

     0   :  { %6 = vsyncpa [#allocation4], 0  ;;  %s185_s0 = inlined_call_operand.hbm [shape: f32[8,256], index: 0, kind: input, shape index: {}]   ;;  %s186_s1 = inlined_call_operand.hbm [shape: f32[1,8], index: 1, kind: output, shape index: {}]  }
   0x1   :  { %7 = vsyncpa [#allocation5], 0  ;;  %s13_s8 = sshll.u32 %s185_s0, 4  ;;  %s157_s9 = smov [#allocation3]   ;;  %s14_s8 = int_to_ptr.hbm [resolvable:$true] %s13_s8 }
   0x2   :  { %s15_s10 = sshll.u32 %s157_s9, 4  ;;  %s16_s10 = int_to_ptr.vmem [resolvable:$true] %s15_s10 }
   0x3   :  { %18 = dma.hbm_to_vmem [thread:$0]  %s14_s8, 256, %s16_s10, [#allocation4]  }
   0x4   :  { %153 = dma.done.wait [#allocation4], 256  }
   0x5   :  { %154 = vsyncadd [#allocation4], 4294967040  ;;  %v33_v0 = vld [vmem:[#allocation3] sm:$0xff]  ;;  %v34_v1 = vld [vmem:[#allocation3 + $0x8] sm:$0xff]  ;;  %v158_v3 = vmov 0   ;;  %v27_v4 = vlaneseq  ;;  %v159_v6 = vmov 0.0  }
   0x6   :  { %v35_v2 = vadd.f32 %v34_v1, %v33_v0  ;;  %104 = vset.pattern.permute.xlu0 %v158_v3  ;;  %s160_s0 = smov [#allocation6]   ;;  %s90_s14 = sshll.u32 %s186_s1, 4  ;;  %vm81_vm1 = vcmask 57344   ;;  %s91_s14 = int_to_ptr.hbm [resolvable:$true] %s90_s14 }
   0x7   :  { %vm174_vm0 = vcmp.lt.s32.totalorder %v27_v4, 8  ;;  %v67_v17 = vand.u32 127, %v27_v4  ;;  %s88_s11 = sshll.u32 %s160_s0, 4  ;;  %s89_s11 = int_to_ptr.vmem [resolvable:$true] %s88_s11 }
   0x8   :  { %36 = vadd.xlane.f32.xlu0 %v35_v2  ;;  %31 = vst.msk [vmem:[#allocation2] sm:$0x1] %vm174_vm0, %v159_v6 }
   0xf   :  { %v32_v19 = vld [vmem:[#allocation2] sm:$0x1] }
  0x7b   :  { %v37_v7 = vpop.xlane.xlu0 %36 }
  0x7c   :  { %v39_v8 = vperm.slane %v37_v7, 0  ;;  %v40_v9 = vperm.slane %v37_v7, 1  ;;  %v41_v10 = vperm.slane %v37_v7, 2  ;;  %v42_v11 = vperm.slane %v37_v7, 3 }
  0x7d   :  { %v43_v12 = vperm.slane %v37_v7, 4  ;;  %v44_v13 = vperm.slane %v37_v7, 5  ;;  %v45_v14 = vperm.slane %v37_v7, 6  ;;  %v46_v15 = vperm.slane %v37_v7, 7 }
  0x7e   :  { %47 = vst [vmem:[#allocation1] ss:$9 sm:$0xff] %v39_v8 }
  0x7f   :  { %49 = vst [vmem:[#allocation1 + $0x1] ss:$9 sm:$0xff] %v40_v9 }
  0x80   :  { %51 = vst [vmem:[#allocation1 + $0x2] ss:$9 sm:$0xff] %v41_v10 }
  0x81   :  { %53 = vst [vmem:[#allocation1 + $0x3] ss:$9 sm:$0xff] %v42_v11 }
  0x82   :  { %55 = vst [vmem:[#allocation1 + $0x4] ss:$9 sm:$0xff] %v43_v12 }
  0x83   :  { %57 = vst [vmem:[#allocation1 + $0x5] ss:$9 sm:$0xff] %v44_v13 }
  0x84   :  { %59 = vst [vmem:[#allocation1 + $0x6] ss:$9 sm:$0xff] %v45_v14 }
  0x85   :  { %61 = vst [vmem:[#allocation1 + $0x7] ss:$9 sm:$0xff] %v46_v15 }
  0x8c   :  { %v62_v16 = vld [vmem:[#allocation1] sm:$0xff] }
  0x8d   :  { %64 = vperm.xlu0 %104, %v62_v16  }
  0xff   :  { %v65_v18 = vpop.permute.xlu0 %64 }
 0x100   :  { %v68_v20 = vperm.slane %v65_v18, %v67_v17 }
 0x102   :  { %v70_v21 = vadd.f32 %v68_v20, %v32_v19 }
 0x104   :  { %75 = vst.msk [vmem:[#allocation2] sm:$0x1] %vm174_vm0, %v70_v21 }
 0x10b   :  { %v79_v22 = vld [vmem:[#allocation2] sm:$0x1] }
 0x10c   :  { %v80_v23 = vmul.f32 0.00390625, %v79_v22 }
 0x10e   :  { %82 = vst.msk [vmem:[#allocation6] sm:$0x1] %vm81_vm1, %v80_v23 }
 0x10f   :  { %93 = dma.vmem_to_hbm [thread:$0]  %s89_s11, 16, %s91_s14, [#allocation5]  }
 0x110   :  { %155 = dma.done.wait [#allocation5], 16  }
 0x111   :  { %156 = vsyncadd [#allocation5], 4294967280 }
 0x112   :  { %98 = vsyncpa [#allocation4], 1 }
 0x113   :  { %99 = vsyncpa [#allocation5], 1 }

</bundles_post_ra>
